<compile_context>
chip_gen: v5e
topology: v5e:2x2
jax: 0.10.0
libtpu: 0.0.40
codegen_flags: <defaults>
</compile_context>

<pallas_src>
import functools

import jax
import jax.numpy as jnp
from jax import lax
from jax.experimental import pallas as pl
from jax.experimental.pallas import tpu as pltpu


def _cdiv(a, b):
    return (a + b - 1) // b


def _choose_row_split(rows, hw):
    """Smallest S dividing hw with rows*S >= 64, rows*S % 32 == 0 and hw//S >= 128.

    Gives the row axis enough multiple-of-32 blocks for a 2-way "parallel" split
    (v7x megacore) without padding.  Returns 1 when rows is already fine or no
    valid split exists (tiny / awkward shapes — correctness unaffected).
    """
    if rows >= 64 and rows % 32 == 0:
        return 1
    for s in range(1, min(hw, 4096) + 1):
        if hw % s:
            continue
        if hw // s < 128:
            break
        r_tot = rows * s
        if r_tot >= 64 and r_tot % 32 == 0:
            return s
    return 1


def _choose_block_rows(r_tot, max_rows=2048):
    """Largest multiple-of-32 divisor of r_tot that is <= min(r_tot//2, max_rows).

    Multiple-of-32 keeps the int8 one-hot block on its native sublane tile; the
    r_tot//2 cap guarantees >= 2 row blocks when possible.  Falls back to a single
    full-extent block (always legal) otherwise.
    """
    limit = min(r_tot // 2, max_rows)
    best = 0
    d = 32
    while d <= limit:
        if r_tot % d == 0:
            best = d
        d += 32
    return best if best else r_tot


def _make_gdl_kernel(k_steps, rem_cols, block_rows, block_cols):
    """Kernel for one (row-block i, lane-block k) grid step.

    p_ref: (block_rows, block_cols) f32 probas slab.
    t_ref: (block_rows, block_cols) int8 one-hot slab (0/1), widened to f32 in VMEM.
    Accumulates per-row spatial sums over k (innermost, "arbitrary"); on the last
    lane block writes the three per-row partials.  rem_cols != 0 means the last
    lane block overruns the (unpadded) array and its tail lanes must be masked.
    """
    needs_mask = rem_cols != 0

    def kernel(p_ref, t_ref, inter_ref, card_ref, sq_ref,
               inter_acc, card_acc, sq_acc):
        k = pl.program_id(1)

        @pl.when(k == 0)
        def _():
            inter_acc[...] = jnp.zeros_like(inter_acc)
            card_acc[...] = jnp.zeros_like(card_acc)
            sq_acc[...] = jnp.zeros_like(sq_acc)

        p = p_ref[...]                              # (block_rows, block_cols) f32
        t = t_ref[...].astype(jnp.float32)          # int8 -> f32 widen in VMEM (no HBM cost)

        def accumulate(pv, tv):
            inter_acc[...] += jnp.sum(pv * tv, axis=1, keepdims=True)   # (block_rows, 1)
            card_acc[...] += jnp.sum(pv + tv, axis=1, keepdims=True)
            sq_acc[...] += jnp.sum(pv * pv, axis=1, keepdims=True)

        if needs_mask:
            # Only the globally-last lane block is ragged; its out-of-bounds lanes hold
            # stale VMEM (possibly NaN bit patterns) and must be zeroed with a select
            # (NOT a multiply) before entering the row sums.
            @pl.when(k == k_steps - 1)
            def _():
                lane = lax.broadcasted_iota(jnp.int32, (block_rows, block_cols), 1)
                valid = lane < rem_cols
                accumulate(jnp.where(valid, p, 0.0), jnp.where(valid, t, 0.0))

            @pl.when(k != k_steps - 1)
            def _():
                accumulate(p, t)
        else:
            accumulate(p, t)

        @pl.when(k == k_steps - 1)
        def _():
            inter_ref[...] = inter_acc[...]
            card_ref[...] = card_acc[...]
            sq_ref[...] = sq_acc[...]

    return kernel


def _gdl_partials(p2d, t2d, block_bytes):
    """Per-row partial sums (intersection, cardinality, sum(p^2)) via pallas_call."""
    r_tot, cols = p2d.shape

    block_rows = _choose_block_rows(r_tot)

    # ~block_bytes of f32 per step; double-buffered p (x2) + int8 t (x2 x0.25) stays
    # ~2.5x that, i.e. ~20 MiB at the 8 MiB default -> safe under the 32 MiB limit on
    # every generation (v7x has only 64 MiB physical VMEM per TC).
    budget_elems = max(block_bytes // 4, block_rows * 128)
    max_cols = max(128, (budget_elems // block_rows) // 128 * 128)

    if cols <= max_cols:
        block_cols = cols          # full lane extent: no blocking, no mask needed
        k_steps = 1
        rem = 0
    else:
        block_cols = max_cols      # multiple of 128, lane-dense
        k_steps = _cdiv(cols, block_cols)
        rem = cols % block_cols    # ragged tail handled in-kernel (no padding)

    grid = (r_tot // block_rows, k_steps)
    kernel = _make_gdl_kernel(k_steps, rem, block_rows, block_cols)

    out_spec = pl.BlockSpec((block_rows, 1), lambda i, k: (i, 0))

    return pl.pallas_call(
        kernel,
        out_shape=(
            jax.ShapeDtypeStruct((r_tot, 1), jnp.float32),
            jax.ShapeDtypeStruct((r_tot, 1), jnp.float32),
            jax.ShapeDtypeStruct((r_tot, 1), jnp.float32),
        ),
        grid_spec=pltpu.PrefetchScalarGridSpec(
            num_scalar_prefetch=0,
            grid=grid,
            in_specs=[
                pl.BlockSpec((block_rows, block_cols), lambda i, k: (i, k)),
                pl.BlockSpec((block_rows, block_cols), lambda i, k: (i, k)),
            ],
            out_specs=[out_spec, out_spec, out_spec],
            scratch_shapes=[
                pltpu.VMEM((block_rows, 1), jnp.float32),   # intersection accumulator
                pltpu.VMEM((block_rows, 1), jnp.float32),   # cardinality accumulator
                pltpu.VMEM((block_rows, 1), jnp.float32),   # sum(p^2) accumulator
            ],
        ),
        compiler_params=pltpu.CompilerParams(
            dimension_semantics=("parallel", "arbitrary"),
            vmem_limit_bytes=32 * 1024 * 1024,
            # Let XLA fuse the one-hot producer into the (int8) target operand stream.
            allow_input_fusion=[False, True],
        ),
    )(p2d, t2d)


def generalised_dice_loss(model_output, target, eps=1e-7, block_bytes=8 * 1024 * 1024):
    N, C, H, W = model_output.shape
    rows = N * C
    HW = H * W

    # Torch-exact one-hot: eye(C)[target.squeeze(1)] -> (N,H,W,C) followed by a RAW
    # reshape (NOT a transpose) to probas.shape, faithfully matching the reference
    # module's .reshape.  Streamed as int8 so the target HBM read is 4x smaller.
    labels = jnp.squeeze(target, axis=1).astype(jnp.int32)
    t2d = jax.nn.one_hot(labels, C, dtype=jnp.int8).reshape(rows, HW)
    p2d = model_output.astype(jnp.float32).reshape(rows, HW)

    # Row-split: fold part of the spatial extent into the row axis (free contiguous
    # reshape, no copies) so the parallel row axis has >= 2 blocks; per-sub-row
    # partials are re-summed below, so the math is unchanged.
    S = _choose_row_split(rows, HW)
    r_tot, cols = rows * S, HW // S
    p2d = p2d.reshape(r_tot, cols)
    t2d = t2d.reshape(r_tot, cols)

    inter_p, card_p, sq_p = _gdl_partials(p2d, t2d, block_bytes)

    inter = jnp.sum(inter_p.reshape(rows, S), axis=1)
    card = jnp.sum(card_p.reshape(rows, S), axis=1)
    sq = jnp.sum(sq_p.reshape(rows, S), axis=1)

    # Torch-exact: weights = 1/sum(p^2) with no eps (only the global denominator gets
    # eps).  Computed in JAX on exact per-row sums, so no padded-row inf/NaN anywhere.
    w = 1.0 / sq
    num = jnp.sum(w * inter)
    den = jnp.sum(w * card)
    return 1.0 - 2.0 * num / (den + eps)


def _reference_loss(model_output, target, eps=1e-7):
    """Pure-JAX replica of the PyTorch forward (for verification)."""
    N, C, H, W = model_output.shape
    t1h = jax.nn.one_hot(jnp.squeeze(target, axis=1).astype(jnp.int32), C,
                         dtype=jnp.float32).reshape((N, C, H, W))
    p = model_output.astype(jnp.float32)
    dims = (2, 3)
    inter = jnp.sum(p * t1h, axis=dims)
    card = jnp.sum(p + t1h, axis=dims)
    w = 1.0 / jnp.sum(p ** 2, axis=dims)
    dice = 2.0 * jnp.sum(w * inter) / (jnp.sum(w * card) + eps)
    return 1.0 - dice


if __name__ == "__main__":
    key = jax.random.PRNGKey(0)
    k1, k2, k3, k4 = jax.random.split(key, 4)

    # Small shape consistent with the module (NCHW logits + integer label map).
    N, C, H, W = 2, 4, 16, 16
    model_output = jax.random.normal(k1, (N, C, H, W), dtype=jnp.float32)
    target = jax.random.randint(k2, (N, 1, H, W), 0, C, dtype=jnp.int32)

    loss = jax.block_until_ready(jax.jit(generalised_dice_loss)(model_output, target))
    ref = jax.block_until_ready(_reference_loss(model_output, target))
    assert jnp.allclose(loss, ref, rtol=1e-4, atol=1e-5), (loss, ref)

    # Second config with an artificially small block budget to exercise the blocked
    # path: >=2 parallel row blocks, multi-step lane reduction and the ragged-tail mask.
    N2, C2, H2, W2 = 16, 4, 48, 48
    mo2 = jax.random.normal(k3, (N2, C2, H2, W2), dtype=jnp.float32)
    tg2 = jax.random.randint(k4, (N2, 1, H2, W2), 0, C2, dtype=jnp.int32)
    small_fn = jax.jit(functools.partial(generalised_dice_loss, block_bytes=64 * 1024))
    loss2 = jax.block_until_ready(small_fn(mo2, tg2))
    ref2 = jax.block_until_ready(_reference_loss(mo2, tg2))
    assert jnp.allclose(loss2, ref2, rtol=1e-4, atol=1e-5), (loss2, ref2)

    print("KERNEL_OK")
</pallas_src>

<mosaic_0001>
module attributes {stable_mosaic.version = 11 : i64} {
  func.func @kernel(%arg0: i32, %arg1: i32, %arg2: memref<8x256xf32, #tpu.memory_space<vmem>>, %arg3: memref<8x256xi8, #tpu.memory_space<vmem>>, %arg4: memref<8x1xf32, #tpu.memory_space<vmem>>, %arg5: memref<8x1xf32, #tpu.memory_space<vmem>>, %arg6: memref<8x1xf32, #tpu.memory_space<vmem>>, %arg7: memref<8x1xf32, #tpu.memory_space<vmem>>, %arg8: memref<8x1xf32, #tpu.memory_space<vmem>>, %arg9: memref<8x1xf32, #tpu.memory_space<vmem>>) attributes {dimension_semantics = [#tpu.dimension_semantics<parallel>, #tpu.dimension_semantics<arbitrary>], iteration_bounds = array<i64: 1, 1>, scalar_prefetch = 0 : i64, scratch_operands = 3 : i64, tpu.core_type = #tpu.core_type<tc>, window_params = [{transform_indices = @transform_0, window_bounds = array<i64: 8, 256>}, {transform_indices = @transform_1, window_bounds = array<i64: 8, 256>}, {transform_indices = @transform_2, window_bounds = array<i64: 8, 1>}, {transform_indices = @transform_3, window_bounds = array<i64: 8, 1>}, {transform_indices = @transform_4, window_bounds = array<i64: 8, 1>}]} {
    %c0_i32 = arith.constant 0 : i32
    %0 = arith.cmpi eq, %arg1, %c0_i32 : i32
    %1 = arith.extui %0 : i1 to i32
    %c0_i32_0 = arith.constant 0 : i32
    %2 = arith.cmpi ne, %1, %c0_i32_0 : i32
    scf.if %2 {
      %cst_20 = arith.constant 0.000000e+00 : f32
      %27 = vector.broadcast %cst_20 : f32 to vector<8x1xf32>
      %c0_21 = arith.constant 0 : index
      %c0_22 = arith.constant 0 : index
      %28 = vector.load %arg7[%c0_21, %c0_22] : memref<8x1xf32, #tpu.memory_space<vmem>>, vector<8x1xf32>
      tpu.vector_store %arg7[%c0_21, %c0_22], %27 {strides = array<i32>} : memref<8x1xf32, #tpu.memory_space<vmem>>, vector<8x1xf32>,
      %cst_23 = arith.constant 0.000000e+00 : f32
      %29 = vector.broadcast %cst_23 : f32 to vector<8x1xf32>
      %c0_24 = arith.constant 0 : index
      %c0_25 = arith.constant 0 : index
      %30 = vector.load %arg8[%c0_24, %c0_25] : memref<8x1xf32, #tpu.memory_space<vmem>>, vector<8x1xf32>
      tpu.vector_store %arg8[%c0_24, %c0_25], %29 {strides = array<i32>} : memref<8x1xf32, #tpu.memory_space<vmem>>, vector<8x1xf32>,
      %cst_26 = arith.constant 0.000000e+00 : f32
      %31 = vector.broadcast %cst_26 : f32 to vector<8x1xf32>
      %c0_27 = arith.constant 0 : index
      %c0_28 = arith.constant 0 : index
      %32 = vector.load %arg9[%c0_27, %c0_28] : memref<8x1xf32, #tpu.memory_space<vmem>>, vector<8x1xf32>
      tpu.vector_store %arg9[%c0_27, %c0_28], %31 {strides = array<i32>} : memref<8x1xf32, #tpu.memory_space<vmem>>, vector<8x1xf32>,
    } else {
    }
    %c0 = arith.constant 0 : index
    %c0_1 = arith.constant 0 : index
    %3 = vector.load %arg2[%c0, %c0_1] : memref<8x256xf32, #tpu.memory_space<vmem>>, vector<8x256xf32>
    %c0_2 = arith.constant 0 : index
    %c0_3 = arith.constant 0 : index
    %4 = vector.load %arg3[%c0_2, %c0_3] : memref<8x256xi8, #tpu.memory_space<vmem>>, vector<8x256xi8>
    %5 = arith.sitofp %4 : vector<8x256xi8> to vector<8x256xf32>
    %c0_4 = arith.constant 0 : index
    %c0_5 = arith.constant 0 : index
    %6 = vector.load %arg7[%c0_4, %c0_5] : memref<8x1xf32, #tpu.memory_space<vmem>>, vector<8x1xf32>
    %7 = arith.mulf %3, %5 : vector<8x256xf32>
    %cst = arith.constant dense<0.000000e+00> : vector<8xf32>
    %8 = vector.multi_reduction <add>, %7, %cst [1] : vector<8x256xf32> to vector<8xf32>
    %9 = vector.shape_cast %8 : vector<8xf32> to vector<8x1xf32>
    %10 = arith.addf %6, %9 : vector<8x1xf32>
    %c0_6 = arith.constant 0 : index
    %c0_7 = arith.constant 0 : index
    %11 = vector.load %arg7[%c0_6, %c0_7] : memref<8x1xf32, #tpu.memory_space<vmem>>, vector<8x1xf32>
    tpu.vector_store %arg7[%c0_6, %c0_7], %10 {strides = array<i32>} : memref<8x1xf32, #tpu.memory_space<vmem>>, vector<8x1xf32>,
    %c0_8 = arith.constant 0 : index
    %c0_9 = arith.constant 0 : index
    %12 = vector.load %arg8[%c0_8, %c0_9] : memref<8x1xf32, #tpu.memory_space<vmem>>, vector<8x1xf32>
    %13 = arith.addf %3, %5 : vector<8x256xf32>
    %cst_10 = arith.constant dense<0.000000e+00> : vector<8xf32>
    %14 = vector.multi_reduction <add>, %13, %cst_10 [1] : vector<8x256xf32> to vector<8xf32>
    %15 = vector.shape_cast %14 : vector<8xf32> to vector<8x1xf32>
    %16 = arith.addf %12, %15 : vector<8x1xf32>
    %c0_11 = arith.constant 0 : index
    %c0_12 = arith.constant 0 : index
    %17 = vector.load %arg8[%c0_11, %c0_12] : memref<8x1xf32, #tpu.memory_space<vmem>>, vector<8x1xf32>
    tpu.vector_store %arg8[%c0_11, %c0_12], %16 {strides = array<i32>} : memref<8x1xf32, #tpu.memory_space<vmem>>, vector<8x1xf32>,
    %c0_13 = arith.constant 0 : index
    %c0_14 = arith.constant 0 : index
    %18 = vector.load %arg9[%c0_13, %c0_14] : memref<8x1xf32, #tpu.memory_space<vmem>>, vector<8x1xf32>
    %19 = arith.mulf %3, %3 : vector<8x256xf32>
    %cst_15 = arith.constant dense<0.000000e+00> : vector<8xf32>
    %20 = vector.multi_reduction <add>, %19, %cst_15 [1] : vector<8x256xf32> to vector<8xf32>
    %21 = vector.shape_cast %20 : vector<8xf32> to vector<8x1xf32>
    %22 = arith.addf %18, %21 : vector<8x1xf32>
    %c0_16 = arith.constant 0 : index
    %c0_17 = arith.constant 0 : index
    %23 = vector.load %arg9[%c0_16, %c0_17] : memref<8x1xf32, #tpu.memory_space<vmem>>, vector<8x1xf32>
    tpu.vector_store %arg9[%c0_16, %c0_17], %22 {strides = array<i32>} : memref<8x1xf32, #tpu.memory_space<vmem>>, vector<8x1xf32>,
    %c0_i32_18 = arith.constant 0 : i32
    %24 = arith.cmpi eq, %arg1, %c0_i32_18 : i32
    %25 = arith.extui %24 : i1 to i32
    %c0_i32_19 = arith.constant 0 : i32
    %26 = arith.cmpi ne, %25, %c0_i32_19 : i32
    scf.if %26 {
      %c0_20 = arith.constant 0 : index
      %c0_21 = arith.constant 0 : index
      %27 = vector.load %arg7[%c0_20, %c0_21] : memref<8x1xf32, #tpu.memory_space<vmem>>, vector<8x1xf32>
      %c0_22 = arith.constant 0 : index
      %c0_23 = arith.constant 0 : index
      %28 = vector.load %arg4[%c0_22, %c0_23] : memref<8x1xf32, #tpu.memory_space<vmem>>, vector<8x1xf32>
      tpu.vector_store %arg4[%c0_22, %c0_23], %27 {strides = array<i32>} : memref<8x1xf32, #tpu.memory_space<vmem>>, vector<8x1xf32>,
      %c0_24 = arith.constant 0 : index
      %c0_25 = arith.constant 0 : index
      %29 = vector.load %arg8[%c0_24, %c0_25] : memref<8x1xf32, #tpu.memory_space<vmem>>, vector<8x1xf32>
      %c0_26 = arith.constant 0 : index
      %c0_27 = arith.constant 0 : index
      %30 = vector.load %arg5[%c0_26, %c0_27] : memref<8x1xf32, #tpu.memory_space<vmem>>, vector<8x1xf32>
      tpu.vector_store %arg5[%c0_26, %c0_27], %29 {strides = array<i32>} : memref<8x1xf32, #tpu.memory_space<vmem>>, vector<8x1xf32>,
      %c0_28 = arith.constant 0 : index
      %c0_29 = arith.constant 0 : index
      %31 = vector.load %arg9[%c0_28, %c0_29] : memref<8x1xf32, #tpu.memory_space<vmem>>, vector<8x1xf32>
      %c0_30 = arith.constant 0 : index
      %c0_31 = arith.constant 0 : index
      %32 = vector.load %arg6[%c0_30, %c0_31] : memref<8x1xf32, #tpu.memory_space<vmem>>, vector<8x1xf32>
      tpu.vector_store %arg6[%c0_30, %c0_31], %31 {strides = array<i32>} : memref<8x1xf32, #tpu.memory_space<vmem>>, vector<8x1xf32>,
    } else {
    }
    return
  }
  func.func @transform_0(%arg0: i32, %arg1: i32) -> (i32, i32) {
    %c0_i32 = arith.constant 0 : i32
    return %arg0, %arg1 : i32, i32
  }
  func.func @transform_1(%arg0: i32, %arg1: i32) -> (i32, i32) {
    %c0_i32 = arith.constant 0 : i32
    return %arg0, %arg1 : i32, i32
  }
  func.func @transform_2(%arg0: i32, %arg1: i32) -> (i32, i32) {
    %c0_i32 = arith.constant 0 : i32
    %c0_i32_0 = arith.constant 0 : i32
    return %arg0, %c0_i32 : i32, i32
  }
  func.func @transform_3(%arg0: i32, %arg1: i32) -> (i32, i32) {
    %c0_i32 = arith.constant 0 : i32
    %c0_i32_0 = arith.constant 0 : i32
    return %arg0, %c0_i32 : i32, i32
  }
  func.func @transform_4(%arg0: i32, %arg1: i32) -> (i32, i32) {
    %c0_i32 = arith.constant 0 : i32
    %c0_i32_0 = arith.constant 0 : i32
    return %arg0, %c0_i32 : i32, i32
  }
}

</mosaic_0001>

<bundles_post_ra>
// kernel: generalised_dice_loss.1
= control target key start
LH: loop header
LB: loop body
LE: loop exit
PB: predicated region body
PF: predicated region fallthrough
CT: control target
= control target key end

     0   :  { %vm18_vm0 = vcmask 7168   ;;  %v76_v3 = vmov 0.0   ;;  %s129_s0 = inlined_call_operand.vmem [shape: f32[8,256], index: 0, kind: input, shape index: {}]   ;;  %s130_s1 = inlined_call_operand.vmem [shape: s8[8,256], index: 1, kind: input, shape index: {}]   ;;  %s131_s4 = inlined_call_operand.vmem [shape: f32[8,1], index: 4, kind: output, shape index: {2}]   ;;  %s132_s2 = inlined_call_operand.vmem [shape: f32[8,1], index: 2, kind: output, shape index: {0}]   ;;  %s133_s3 = inlined_call_operand.vmem [shape: f32[8,1], index: 3, kind: output, shape index: {1}]  }
   0x1   :  { %v22_v0 = vld [vmem:[%s129_s0] sm:$0xff]  ;;  %v23_v1 = vld [vmem:[%s129_s0 + $0x8] sm:$0xff]  ;;  %19 = vst.msk [vmem:[#allocation2] sm:$0xff] %vm18_vm0, %v76_v3 }
   0x2   :  { %v24_v2 = vld [vmem:[%s130_s1] sm:$0xf]  ;;  %v47_v6 = vmul.f32 %v22_v0, %v22_v0  ;;  %v48_v7 = vmul.f32 %v23_v1, %v23_v1  ;;  %20 = vst.msk [vmem:[#allocation3] sm:$0xff] %vm18_vm0, %v76_v3 }
   0x3   :  { %v25_v4 = vunpack.c.0.s8 %v24_v2  ;;  %v26_v5 = vunpack.c.1.s8 %v24_v2  ;;  %21 = vst.msk [vmem:[#allocation4] sm:$0xff] %vm18_vm0, %v76_v3 }
   0x4   :  { %v49_v10 = vadd.f32 %v48_v7, %v47_v6 }
   0x5   :  { %v27_v8 = vcvt.s32.f32 %v25_v4  ;;  %v28_v9 = vcvt.s32.f32 %v26_v5 }
   0x6   :  { %50 = vadd.xlane.f32.xlu1 %v49_v10 }
   0x7   :  { %v30_v11 = vmul.f32 %v27_v8, %v22_v0  ;;  %v31_v12 = vmul.f32 %v28_v9, %v23_v1  ;;  %v39_v14 = vadd.f32 %v27_v8, %v22_v0  ;;  %v40_v15 = vadd.f32 %v28_v9, %v23_v1 }
   0x8   :  { %v29_v20 = vld [vmem:[#allocation2] sm:$0xff] }
   0x9   :  { %v32_v13 = vadd.f32 %v31_v12, %v30_v11  ;;  %v41_v16 = vadd.f32 %v40_v15, %v39_v14  ;;  %v38_v24 = vld [vmem:[#allocation3] sm:$0xff] }
   0xa   :  { %v46_v17 = vld [vmem:[#allocation4] sm:$0xff] }
   0xb   :  { %33 = vadd.xlane.f32.xlu0 %v32_v13 }
  0x13   :  { %42 = vadd.xlane.f32.xlu0 %v41_v16 }
  0x79   :  { %v51_v18 = vpop.xlane.xlu1 %50 }
  0x7a   :  { %v52_v19 = vadd.f32 %v51_v18, %v46_v17 }
  0x7c   :  { %53 = vst.msk [vmem:[#allocation4] sm:$0xff] %vm18_vm0, %v52_v19 }
  0x7e   :  { %v34_v21 = vpop.xlane.xlu0 %33 }
  0x7f   :  { %v35_v22 = vadd.f32 %v34_v21, %v29_v20 }
  0x81   :  { %37 = vst.msk [vmem:[#allocation2] sm:$0xff] %vm18_vm0, %v35_v22 }
  0x83   :  { %v61_v23 = vld [vmem:[#allocation4] sm:$0xff] }
  0x84   :  { %62 = vst.msk [vmem:[%s131_s4] sm:$0xff] %vm18_vm0, %v61_v23 }
  0x86   :  { %v43_v25 = vpop.xlane.xlu0 %42 }
  0x87   :  { %v44_v26 = vadd.f32 %v43_v25, %v38_v24 }
  0x88   :  { %v57_v27 = vld [vmem:[#allocation2] sm:$0xff] }
  0x89   :  { %58 = vst.msk [vmem:[%s132_s2] sm:$0xff] %vm18_vm0, %v57_v27 }
  0x8a   :  { %45 = vst.msk [vmem:[#allocation3] sm:$0xff] %vm18_vm0, %v44_v26 }
  0x91   :  { %v59_v28 = vld [vmem:[#allocation3] sm:$0xff] }
  0x92   :  { %60 = vst.msk [vmem:[%s133_s3] sm:$0xff] %vm18_vm0, %v59_v28 }

</bundles_post_ra>
